<compile_context>
chip_gen: v6e
topology: v6e:2x2x1
jax: 0.10.0
libtpu: 0.0.40
codegen_flags: <defaults>
</compile_context>

<pallas_src>
import jax
import jax.numpy as jnp
from jax import lax
from jax.experimental import pallas as pl
from jax.experimental.pallas import tpu as pltpu

FEATURE_D = 512
EPS = 1e-5


def _round_up(v, m):
    return ((v + m - 1) // m) * m


def _stats_kernel(x_ref, sum_ref, sumsq_ref):
    """Accumulate per-feature sum and sum-of-squares across batch tiles."""
    @pl.when(pl.program_id(0) == 0)
    def _():
        sum_ref[...] = jnp.zeros_like(sum_ref)
        sumsq_ref[...] = jnp.zeros_like(sumsq_ref)

    x = x_ref[...]
    if x.dtype != jnp.float32:
        x = x.astype(jnp.float32)          # accumulate in f32 regardless of input dtype
    sum_ref[...] += jnp.sum(x, axis=0, keepdims=True)
    sumsq_ref[...] += jnp.sum(x * x, axis=0, keepdims=True)


def _normalize_kernel(x_ref, scale_ref, shift_ref, o_ref):
    """Pure streaming pass: y = x * scale + shift (scale/shift are resident (1, D))."""
    o_ref[...] = (x_ref[...] * scale_ref[...] + shift_ref[...]).astype(o_ref.dtype)


def batchnorm1d_pallas(x2d, gamma, beta):
    """x2d: (N, FEATURE_D); gamma/beta: (FEATURE_D,). Training-mode BN forward."""
    n, d = x2d.shape
    assert d == FEATURE_D

    # Row tile: multiple of 8 sublanes, up to 512 rows (~1 MiB f32) for pipelining.
    tile_rows = min(512, _round_up(n, 8))
    n_pad = _round_up(n, tile_rows)
    x_in = jnp.pad(x2d, ((0, n_pad - n), (0, 0))) if n_pad != n else x2d
    num_tiles = n_pad // tile_rows

    # ---- pass 1: per-feature sum / sum-of-squares (reduction over batch tiles) ----
    sums, sumsqs = pl.pallas_call(
        _stats_kernel,
        out_shape=(jax.ShapeDtypeStruct((1, d), jnp.float32),
                   jax.ShapeDtypeStruct((1, d), jnp.float32)),
        grid_spec=pltpu.PrefetchScalarGridSpec(
            num_scalar_prefetch=0,
            grid=(num_tiles,),
            in_specs=[pl.BlockSpec((tile_rows, d), lambda i: (i, 0))],
            out_specs=(pl.BlockSpec((1, d), lambda i: (0, 0)),
                       pl.BlockSpec((1, d), lambda i: (0, 0))),
        ),
        compiler_params=pltpu.CompilerParams(
            dimension_semantics=("arbitrary",)),
    )(x_in)

    # Tiny (1, 512) math outside the kernels: fold mean/var/gamma/beta into a single
    # per-feature scale/shift so the streamed pass does only mul + add per element.
    inv_n = 1.0 / n                         # divide by the REAL row count (padding adds 0)
    mean = sums * inv_n
    var = jnp.maximum(sumsqs * inv_n - mean * mean, 0.0)   # biased variance (training BN)
    inv_std = lax.rsqrt(var + EPS)
    scale = inv_std * gamma.reshape(1, d).astype(jnp.float32)
    shift = beta.reshape(1, d).astype(jnp.float32) - mean * scale

    # ---- pass 2: streamed normalize, tiles independent → "parallel" for megacore ----
    out = pl.pallas_call(
        _normalize_kernel,
        out_shape=jax.ShapeDtypeStruct((n_pad, d), x2d.dtype),
        grid_spec=pltpu.PrefetchScalarGridSpec(
            num_scalar_prefetch=0,
            grid=(num_tiles,),
            in_specs=[pl.BlockSpec((tile_rows, d), lambda i: (i, 0)),
                      pl.BlockSpec((1, d), lambda i: (0, 0)),   # scale: resident
                      pl.BlockSpec((1, d), lambda i: (0, 0))],  # shift: resident
            out_specs=pl.BlockSpec((tile_rows, d), lambda i: (i, 0)),
        ),
        compiler_params=pltpu.CompilerParams(
            dimension_semantics=("parallel",)),
    )(x_in, scale, shift)

    return out[:n] if n_pad != n else out


def task_norm_forward(x, gamma, beta):
    """Reproduces Task_norm.forward (training-mode BatchNorm1d forward output)."""
    if x.ndim == 3:
        x2d = x.reshape(-1, FEATURE_D)
        out = batchnorm1d_pallas(x2d, gamma, beta)
        return out.reshape(5, -1, FEATURE_D)
    else:
        return batchnorm1d_pallas(x, gamma, beta)


if __name__ == "__main__":
    key = jax.random.PRNGKey(0)
    # 3-D input exercises the x.view(-1, 512) / .view(5, -1, 512) branch.
    x = jax.random.normal(key, (5, 2, FEATURE_D), dtype=jnp.float32) * 2.0 + 0.5

    # nn.BatchNorm1d affine params: weight initialized to ones, bias to zeros.
    gamma = jnp.ones((FEATURE_D,), dtype=jnp.float32)
    beta = jnp.zeros((FEATURE_D,), dtype=jnp.float32)

    out = task_norm_forward(x, gamma, beta)
    out = jax.block_until_ready(out)

    # Pure-JAX reference check (training-mode batchnorm over flattened batch).
    x2d = x.reshape(-1, FEATURE_D)
    mean = jnp.mean(x2d, axis=0, keepdims=True)
    var = jnp.mean((x2d - mean) ** 2, axis=0, keepdims=True)
    ref = ((x2d - mean) / jnp.sqrt(var + EPS) * gamma + beta).reshape(5, -1, FEATURE_D)
    assert out.shape == (5, 2, FEATURE_D)
    assert jnp.max(jnp.abs(out - ref)) < 1e-4

    print("KERNEL_OK")
</pallas_src>

<mosaic_0001>
module attributes {stable_mosaic.version = 11 : i64} {
  func.func @_stats_kernel(%arg0: i32, %arg1: memref<16x512xf32, #tpu.memory_space<vmem>>, %arg2: memref<1x512xf32, #tpu.memory_space<vmem>>, %arg3: memref<1x512xf32, #tpu.memory_space<vmem>>) attributes {dimension_semantics = [#tpu.dimension_semantics<arbitrary>], iteration_bounds = array<i64: 1>, scalar_prefetch = 0 : i64, scratch_operands = 0 : i64, tpu.core_type = #tpu.core_type<tc>, window_params = [{transform_indices = @transform_0, window_bounds = array<i64: 16, 512>}, {pipeline_mode = #tpu.pipeline_mode<synchronous>, transform_indices = @transform_1, window_bounds = array<i64: 1, 512>}, {pipeline_mode = #tpu.pipeline_mode<synchronous>, transform_indices = @transform_2, window_bounds = array<i64: 1, 512>}]} {
    %c0_i32 = arith.constant 0 : i32
    %0 = arith.cmpi eq, %arg0, %c0_i32 : i32
    %1 = arith.extui %0 : i1 to i32
    %c0_i32_0 = arith.constant 0 : i32
    %2 = arith.cmpi ne, %1, %c0_i32_0 : i32
    scf.if %2 {
      %cst_11 = arith.constant 0.000000e+00 : f32
      %15 = vector.broadcast %cst_11 : f32 to vector<1x512xf32>
      %c0_12 = arith.constant 0 : index
      %c0_13 = arith.constant 0 : index
      %16 = vector.load %arg2[%c0_12, %c0_13] : memref<1x512xf32, #tpu.memory_space<vmem>>, vector<1x512xf32>
      tpu.vector_store %arg2[%c0_12, %c0_13], %15 {strides = array<i32>} : memref<1x512xf32, #tpu.memory_space<vmem>>, vector<1x512xf32>,
      %cst_14 = arith.constant 0.000000e+00 : f32
      %17 = vector.broadcast %cst_14 : f32 to vector<1x512xf32>
      %c0_15 = arith.constant 0 : index
      %c0_16 = arith.constant 0 : index
      %18 = vector.load %arg3[%c0_15, %c0_16] : memref<1x512xf32, #tpu.memory_space<vmem>>, vector<1x512xf32>
      tpu.vector_store %arg3[%c0_15, %c0_16], %17 {strides = array<i32>} : memref<1x512xf32, #tpu.memory_space<vmem>>, vector<1x512xf32>,
    } else {
    }
    %c0 = arith.constant 0 : index
    %c0_1 = arith.constant 0 : index
    %3 = vector.load %arg1[%c0, %c0_1] : memref<16x512xf32, #tpu.memory_space<vmem>>, vector<16x512xf32>
    %c0_2 = arith.constant 0 : index
    %c0_3 = arith.constant 0 : index
    %4 = vector.load %arg2[%c0_2, %c0_3] : memref<1x512xf32, #tpu.memory_space<vmem>>, vector<1x512xf32>
    %cst = arith.constant dense<0.000000e+00> : vector<512xf32>
    %5 = vector.multi_reduction <add>, %3, %cst [0] : vector<16x512xf32> to vector<512xf32>
    %6 = vector.shape_cast %5 : vector<512xf32> to vector<1x512xf32>
    %7 = arith.addf %4, %6 : vector<1x512xf32>
    %c0_4 = arith.constant 0 : index
    %c0_5 = arith.constant 0 : index
    %8 = vector.load %arg2[%c0_4, %c0_5] : memref<1x512xf32, #tpu.memory_space<vmem>>, vector<1x512xf32>
    tpu.vector_store %arg2[%c0_4, %c0_5], %7 {strides = array<i32>} : memref<1x512xf32, #tpu.memory_space<vmem>>, vector<1x512xf32>,
    %c0_6 = arith.constant 0 : index
    %c0_7 = arith.constant 0 : index
    %9 = vector.load %arg3[%c0_6, %c0_7] : memref<1x512xf32, #tpu.memory_space<vmem>>, vector<1x512xf32>
    %10 = arith.mulf %3, %3 : vector<16x512xf32>
    %cst_8 = arith.constant dense<0.000000e+00> : vector<512xf32>
    %11 = vector.multi_reduction <add>, %10, %cst_8 [0] : vector<16x512xf32> to vector<512xf32>
    %12 = vector.shape_cast %11 : vector<512xf32> to vector<1x512xf32>
    %13 = arith.addf %9, %12 : vector<1x512xf32>
    %c0_9 = arith.constant 0 : index
    %c0_10 = arith.constant 0 : index
    %14 = vector.load %arg3[%c0_9, %c0_10] : memref<1x512xf32, #tpu.memory_space<vmem>>, vector<1x512xf32>
    tpu.vector_store %arg3[%c0_9, %c0_10], %13 {strides = array<i32>} : memref<1x512xf32, #tpu.memory_space<vmem>>, vector<1x512xf32>,
    return
  }
  func.func @transform_0(%arg0: i32) -> (i32, i32) {
    %c0_i32 = arith.constant 0 : i32
    %c0_i32_0 = arith.constant 0 : i32
    return %arg0, %c0_i32 : i32, i32
  }
  func.func @transform_1(%arg0: i32) -> (i32, i32) {
    %c0_i32 = arith.constant 0 : i32
    %c0_i32_0 = arith.constant 0 : i32
    %c0_i32_1 = arith.constant 0 : i32
    return %c0_i32, %c0_i32_0 : i32, i32
  }
  func.func @transform_2(%arg0: i32) -> (i32, i32) {
    %c0_i32 = arith.constant 0 : i32
    %c0_i32_0 = arith.constant 0 : i32
    %c0_i32_1 = arith.constant 0 : i32
    return %c0_i32, %c0_i32_0 : i32, i32
  }
}

</mosaic_0001>

<bundles_post_ra>
// kernel: tpu_custom_call.1
= control target key start
LH: loop header
LB: loop body
LE: loop exit
PB: predicated region body
PF: predicated region fallthrough
CT: control target
= control target key end

     0   :  { %8 = vsyncpa [#allocation3], 0  ;;  %s329_s0 = inlined_call_operand.hbm [shape: f32[16,512], index: 0, kind: input, shape index: {}]   ;;  %s330_s1 = inlined_call_operand.hbm [shape: f32[1,512], index: 1, kind: output, shape index: {0}]   ;;  %s331_s2 = inlined_call_operand.hbm [shape: f32[1,512], index: 2, kind: output, shape index: {1}]  }
   0x1   :  { %9 = vsyncpa [#allocation4], 0 }
   0x2   :  { %10 = vsyncpa [#allocation7], 0  ;;  %s278_s9 = smov [#allocation2]  }
   0x3   :  { %s16_s10 = sshll.u32 %s278_s9, 4  ;;  %s17_s10 = int_to_ptr.vmem [resolvable:$true] %s16_s10 }
   0x4   :  { %s220_s11 = scalar_lea.vmem %s17_s10, 1024  ;;  %p225_p1 = scmp.lt.s32.totalorder %s17_s10, %s17_s10 }
   0x5   :  { %p221_p0 = scmp.ne.s32.totalorder %s17_s10, %s220_s11  ;;  %p226_p2 = scmp.lt.s32.totalorder %s220_s11, %s220_s11 }
   0x7   :  { %p227_p3 = por %p226_p2, %p225_p1 }
   0x9   :  { %p228_p4 = pnand %p227_p3, %p221_p0 }
   0xb   :  { %231 = shalt.err (!%p228_p4)
}
   0xc   :  { %s279_s12 = smov 512   ;;  %s280_s13 = smov 32  }
   0xd   :  { %22 = dma.hbm_to_vmem [thread:$0]  %s329_s0, 1024, %s17_s10, [#allocation3], %s279_s12, %s279_s12, %s280_s13  }
   0xe   :  { %272 = dma.done.wait [#allocation3], 1024  }
   0xf   :  { %273 = vsyncadd [#allocation3], 4294966272  ;;  %v30_v0 = vlaneseq  ;;  %v281_v1 = vmov 1966171168   ;;  %v282_v4 = vmov 0.0   ;;  %v36_v7 = vld [vmem:[#allocation2] sm:$0xff] }
  0x10   :  { %v80_v2 = vunpack.c.l.s4 %v281_v1  ;;  %v37_v8 = vld [vmem:[#allocation2 + $0x8] sm:$0xff]  ;;  %v38_v9 = vld [vmem:[#allocation2 + $0x10] sm:$0xff]  ;;  %v39_v11 = vld [vmem:[#allocation2 + $0x18] sm:$0xff]  ;;  %v109_v14 = vmul.f32 %v36_v7, %v36_v7  ;;  %s283_s0 = smov [#allocation5]   ;;  %s284_s17 = smov [#allocation6]  }
  0x11   :  { %vm303_vm0 = vcmp.lt.s32.totalorder %v30_v0, 512  ;;  %v83_v6 = vshrl.u32 %v30_v0, 7  ;;  %v40_v12 = vld [vmem:[#allocation2 + $0x20] sm:$0xff]  ;;  %v41_v13 = vld [vmem:[#allocation2 + $0x28] sm:$0xff]  ;;  %v110_v15 = vmul.f32 %v37_v8, %v37_v8  ;;  %v111_v16 = vmul.f32 %v38_v9, %v38_v9  ;;  %v42_v17 = vld [vmem:[#allocation2 + $0x30] sm:$0xff]  ;;  %s182_s16 = sshll.u32 %s283_s0, 4  ;;  %s183_s16 = int_to_ptr.vmem [resolvable:$true] %s182_s16 }
  0x12   :  { %34 = vst.msk [vmem:[#allocation5] sm:$0xf] %vm303_vm0, %v282_v4  ;;  %35 = vst.msk [vmem:[#allocation6] sm:$0xf] %vm303_vm0, %v282_v4  ;;  %v81_v5 = vunpack.c.0.s8 %v80_v2  ;;  %v43_v18 = vld [vmem:[#allocation2 + $0x38] sm:$0xff]  ;;  %v45_v19 = vadd.f32 %v40_v12, %v36_v7  ;;  %v52_v20 = vadd.f32 %v41_v13, %v37_v8  ;;  %v112_v21 = vmul.f32 %v39_v11, %v39_v11  ;;  %s192_s18 = sshll.u32 %s284_s17, 4  ;;  %p237_p6 = scmp.lt.s32.totalorder %s183_s16, %s183_s16  ;;  %s193_s18 = int_to_ptr.vmem [resolvable:$true] %s192_s18 }
  0x13   :  { %v113_v22 = vmul.f32 %v40_v12, %v40_v12  ;;  %v59_v23 = vadd.f32 %v42_v17, %v38_v9  ;;  %v66_v24 = vadd.f32 %v43_v18, %v39_v11  ;;  %v114_v25 = vmul.f32 %v41_v13, %v41_v13  ;;  %s232_s19 = scalar_lea.vmem %s183_s16, 64 }
  0x14   :  { %v311_v10 = vsub.s32 %v81_v5, %v83_v6  ;;  %v115_v26 = vmul.f32 %v42_v17, %v42_v17  ;;  %v46_v27 = vrot.slane %v45_v19, 4  ;;  %v53_v28 = vrot.slane %v52_v20, 4  ;;  %p233_p5 = scmp.ne.s32.totalorder %s183_s16, %s232_s19  ;;  %p238_p7 = scmp.lt.s32.totalorder %s232_s19, %s232_s19 }
  0x15   :  { %v116_v29 = vmul.f32 %v43_v18, %v43_v18  ;;  %v117_v30 = vadd.f32 %v113_v22, %v109_v14  ;;  %v60_v31 = vrot.slane %v59_v23, 4  ;;  %v67_v32 = vrot.slane %v66_v24, 4 }
  0x16   :  { %v124_v33 = vadd.f32 %v114_v25, %v110_v15  ;;  %v131_v34 = vadd.f32 %v115_v26, %v111_v16  ;;  %v47_v35 = vadd.f32 %v46_v27, %v45_v19  ;;  %v54_v36 = vadd.f32 %v53_v28, %v52_v20  ;;  %p239_p8 = por %p238_p7, %p237_p6 }
  0x17   :  { %v118_v37 = vrot.slane %v117_v30, 4  ;;  %v138_v38 = vadd.f32 %v116_v29, %v112_v21  ;;  %v61_v39 = vadd.f32 %v60_v31, %v59_v23  ;;  %v68_v40 = vadd.f32 %v67_v32, %v66_v24 }
  0x18   :  { %v125_v41 = vrot.slane %v124_v33, 4  ;;  %v132_v42 = vrot.slane %v131_v34, 4  ;;  %v48_v43 = vrot.slane %v47_v35, 2  ;;  %v55_v44 = vrot.slane %v54_v36, 2  ;;  %p240_p9 = pnand %p239_p8, %p233_p5 }
  0x19   :  { %v119_v45 = vadd.f32 %v118_v37, %v117_v30  ;;  %v139_v46 = vrot.slane %v138_v38, 4  ;;  %v62_v47 = vrot.slane %v61_v39, 2  ;;  %v69_v48 = vrot.slane %v68_v40, 2  ;;  %v44_v26 = vld [vmem:[#allocation5] sm:$0xf] }
  0x1a   :  { %v126_v49 = vadd.f32 %v125_v41, %v124_v33  ;;  %v133_v50 = vadd.f32 %v132_v42, %v131_v34  ;;  %v49_v51 = vadd.f32 %v48_v43, %v47_v35  ;;  %v56_v52 = vadd.f32 %v55_v44, %v54_v36  ;;  %v108_v31 = vld [vmem:[#allocation6] sm:$0xf] }
  0x1b   :  { %v120_v53 = vrot.slane %v119_v45, 2  ;;  %v140_v54 = vadd.f32 %v139_v46, %v138_v38  ;;  %v63_v55 = vadd.f32 %v62_v47, %v61_v39  ;;  %v70_v56 = vadd.f32 %v69_v48, %v68_v40 }
  0x1c   :  { %v127_v57 = vrot.slane %v126_v49, 2  ;;  %v134_v58 = vrot.slane %v133_v50, 2  ;;  %v50_v59 = vrot.slane %v49_v51, 1  ;;  %v57_v60 = vrot.slane %v56_v52, 1 }
  0x1d   :  { %v121_v61 = vadd.f32 %v120_v53, %v119_v45  ;;  %v141_v62 = vrot.slane %v140_v54, 2  ;;  %v64_v63 = vrot.slane %v63_v55, 1  ;;  %v71_v0 = vrot.slane %v70_v56, 1 }
  0x1e   :  { %v128_v1 = vadd.f32 %v127_v57, %v126_v49  ;;  %v135_v2 = vadd.f32 %v134_v58, %v133_v50  ;;  %v51_v4 = vadd.f32 %v50_v59, %v49_v51  ;;  %v58_v5 = vadd.f32 %v57_v60, %v56_v52 }
  0x1f   :  { %v122_v6 = vrot.slane %v121_v61, 1  ;;  %v142_v7 = vadd.f32 %v141_v62, %v140_v54  ;;  %v65_v8 = vadd.f32 %v64_v63, %v63_v55  ;;  %v72_v9 = vadd.f32 %v71_v0, %v70_v56 }
  0x20   :  { %v129_v11 = vrot.slane %v128_v1, 1  ;;  %v136_v12 = vrot.slane %v135_v2, 1  ;;  %v77_v13 = vcombine.low %v51_v4, %v58_v5 }
  0x21   :  { %v123_v14 = vadd.f32 %v122_v6, %v121_v61  ;;  %v143_v15 = vrot.slane %v142_v7, 1  ;;  %v78_v16 = vcombine.low %v65_v8, %v72_v9 }
  0x22   :  { %v130_v17 = vadd.f32 %v129_v11, %v128_v1  ;;  %v137_v18 = vadd.f32 %v136_v12, %v135_v2  ;;  %v85_v19 = vrot.slane %v77_v13, %v311_v10 }
  0x23   :  { %v144_v20 = vadd.f32 %v143_v15, %v142_v7  ;;  %v92_v21 = vrot.slane %v78_v16, %v311_v10 }
  0x24   :  { %v149_v22 = vcombine.low %v123_v14, %v130_v17 }
  0x25   :  { %v150_v23 = vcombine.low %v137_v18, %v144_v20  ;;  %v93_v24 = vcombine.low %v85_v19, %v92_v21 }
  0x26   :  { %v157_v25 = vrot.slane %v149_v22, %v311_v10 }
  0x27   :  { %v164_v27 = vrot.slane %v150_v23, %v311_v10  ;;  %v100_v28 = vrot.slane %v93_v24, %v311_v10 }
  0x29   :  { %v165_v29 = vcombine.low %v157_v25, %v164_v27  ;;  %v102_v30 = vadd.f32 %v100_v28, %v44_v26 }
  0x2b   :  { %v172_v32 = vrot.slane %v165_v29, %v311_v10  ;;  %107 = vst.msk [vmem:[#allocation5] sm:$0xf] %vm303_vm0, %v102_v30 }
  0x2d   :  { %v174_v33 = vadd.f32 %v172_v32, %v108_v31 }
  0x2e   :  { %243 = shalt.err (!%p240_p9)
}
  0x2f   :  { %185 = dma.vmem_to_hbm [thread:$0]  %s183_s16, 64, %s330_s1, [#allocation4]   ;;  %175 = vst.msk [vmem:[#allocation6] sm:$0xf] %vm303_vm0, %v174_v33 }
  0x30   :  { %s252_s22 = scalar_lea.vmem %s193_s18, 64  ;;  %p257_p11 = scmp.lt.s32.totalorder %s193_s18, %s193_s18 }
  0x31   :  { %p253_p10 = scmp.ne.s32.totalorder %s193_s18, %s252_s22  ;;  %p258_p12 = scmp.lt.s32.totalorder %s252_s22, %s252_s22 }
  0x33   :  { %p259_p13 = por %p258_p12, %p257_p11 }
  0x35   :  { %p260_p0 = pnand %p259_p13, %p253_p10 }
  0x37   :  { %263 = shalt.err (!%p260_p0)
}
  0x38   :  { %195 = dma.vmem_to_hbm [thread:$0]  %s193_s18, 64, %s331_s2, [#allocation7]  }
  0x39   :  { %274 = dma.done.wait [#allocation4], 64  }
  0x3a   :  { %275 = vsyncadd [#allocation4], 4294967232 }
  0x3b   :  { %276 = dma.done.wait [#allocation7], 64  }
  0x3c   :  { %277 = vsyncadd [#allocation7], 4294967232 }
  0x3d   :  { %202 = vsyncpa [#allocation3], 1 }
  0x3e   :  { %203 = vsyncpa [#allocation4], 1 }
  0x3f   :  { %204 = vsyncpa [#allocation7], 1 }

</bundles_post_ra>
